<compile_context>
chip_gen: v7x
topology: tpu7x:2x2x1
jax: 0.10.0
libtpu: 0.0.40
codegen_flags: <defaults>
</compile_context>

<pallas_src>
import functools
import math

import jax
import jax.numpy as jnp
from jax import lax
from jax.experimental import pallas as pl
from jax.experimental.pallas import tpu as pltpu


def _vit_attention_kernel(x_ref, wqkv_ref, bqkv_ref, wo_ref, bo_ref,
                          o_ref, ctx_ref, *, num_heads, head_dim):
    cdt = x_ref.dtype                      # native MXU compute dtype
    H = num_heads * head_dim
    x = x_ref[...]                         # (Bt, S, H)
    bt = x.shape[0]

    # Fused QKV projection: x (Bt,S,H) @ Wqkv (H,3H) -> (Bt,S,3H), f32 acc.
    qkv = lax.dot_general(x, wqkv_ref[...], (((2,), (0,)), ((), ())),
                          preferred_element_type=jnp.float32)
    qkv = qkv + bqkv_ref[...].astype(jnp.float32)

    # 1/sqrt(head_dim) is already folded into Wq/bq by the wrapper.
    q = qkv[..., 0 * H:1 * H].astype(cdt)
    k = qkv[..., 1 * H:2 * H].astype(cdt)
    v = qkv[..., 2 * H:3 * H].astype(cdt)

    # Per-batch, per-head attention.  bt and num_heads are compile-time
    # constants so these Python loops are fully unrolled; each head writes
    # its context directly into VMEM scratch (no concatenate, bounded lives).
    for b in range(bt):
        for h in range(num_heads):
            sl = slice(h * head_dim, (h + 1) * head_dim)
            qh, kh, vh = q[b, :, sl], k[b, :, sl], v[b, :, sl]   # (S, hd)
            # scores: contract head dims -> (S, S), f32 accumulate.
            s = lax.dot_general(qh, kh, (((1,), (1,)), ((), ())),
                                preferred_element_type=jnp.float32)
            p = jnp.exp(s - jnp.max(s, axis=-1, keepdims=True))
            l = jnp.sum(p, axis=-1, keepdims=True)               # (S, 1)
            # Deferred softmax normalization: unnormalized p @ v, then scale
            # the (S, hd) context by an exact reciprocal (keeps 1e-4 tol).
            ctx_h = jnp.dot(p.astype(cdt), vh,
                            preferred_element_type=jnp.float32)
            ctx_h = ctx_h * pl.reciprocal(l, approx=False)
            # attention-probs dropout / head_mask are identity / None here.
            ctx_ref[b, :, sl] = ctx_h.astype(cdt)

    # ViTSelfOutput.dense (hidden dropout is identity in eval mode).
    ctx = ctx_ref[...]                                            # (Bt, S, H)
    out = lax.dot_general(ctx, wo_ref[...], (((2,), (0,)), ((), ())),
                          preferred_element_type=jnp.float32)
    out = out + bo_ref[...].astype(jnp.float32)
    o_ref[...] = out.astype(o_ref.dtype)


def _pick_block_batch(batch):
    # Amortize per-grid-step overhead while keeping >= 2 grid steps so both
    # TensorCores of a v7x megacore get work.
    for bt in (8, 4, 2):
        if batch % bt == 0 and batch // bt >= 2:
            return bt
    return 1


def vit_attention(hidden_states, wq, bq, wk, bk, wv, bv, wo, bo, *,
                  num_heads, block_batch=None):
    """hidden_states: (B, S, H); w*: (H, H) torch Linear (out,in) layout; b*: (H,)."""
    B, S, H = hidden_states.shape
    assert H % num_heads == 0
    head_dim = H // num_heads
    scale = 1.0 / math.sqrt(head_dim)
    dt = hidden_states.dtype

    bt = _pick_block_batch(B) if block_batch is None else block_batch
    assert B % bt == 0
    grid = (B // bt,)

    # One-time weight prep (constant-folded / hoisted under jit):
    #   torch (out,in) -> (in,out) so the MXU consumes a (K,N) operand,
    #   fuse q/k/v into one operand, fold the softmax scale into Wq/bq.
    w_qkv = jnp.concatenate([wq.T * scale, wk.T, wv.T], axis=1).astype(dt)   # (H, 3H)
    b_qkv = jnp.concatenate([bq * scale, bk, bv]).reshape(1, 3 * H).astype(dt)
    wo_t = wo.T.astype(dt)                                                   # (H, H)
    bo2 = bo.reshape(1, H).astype(dt)

    kernel = functools.partial(_vit_attention_kernel,
                               num_heads=num_heads, head_dim=head_dim)

    x_spec = pl.BlockSpec((bt, S, H), lambda i: (i, 0, 0))
    out_spec = pl.BlockSpec((bt, S, H), lambda i: (i, 0, 0))
    # Constant index_maps -> weights/biases stay resident in VMEM across steps.
    wqkv_spec = pl.BlockSpec((H, 3 * H), lambda i: (0, 0))
    bqkv_spec = pl.BlockSpec((1, 3 * H), lambda i: (0, 0))
    wo_spec = pl.BlockSpec((H, H), lambda i: (0, 0))
    bo_spec = pl.BlockSpec((1, H), lambda i: (0, 0))

    itemsize = jnp.dtype(dt).itemsize
    flops = 8 * B * S * H * H + 4 * B * S * S * H
    transcendentals = B * num_heads * S * S
    bytes_accessed = (2 * B * S * H + 4 * H * H + 4 * H) * itemsize
    cost = pl.CostEstimate(flops=flops, transcendentals=transcendentals,
                           bytes_accessed=bytes_accessed)

    # Explicit VMEM budget: weights/bias + (double-buffered) x/out blocks +
    # ctx scratch + f32 intermediates (qkv, scores, q/k/v copies), with slack.
    weight_bytes = (4 * H * H + 4 * H) * itemsize
    io_bytes = 2 * (2 * bt * S * H * itemsize)          # x + out, double-buffered
    scratch_bytes = bt * S * H * itemsize
    inter_bytes = bt * S * 3 * H * 4 + 2 * S * S * 4 + 3 * bt * S * H * itemsize
    est = 2 * weight_bytes + io_bytes + scratch_bytes + inter_bytes
    vmem_limit = int(min(64 << 20, max(32 << 20, int(est * 1.5))))

    return pl.pallas_call(
        kernel,
        out_shape=jax.ShapeDtypeStruct((B, S, H), dt),
        grid_spec=pltpu.PrefetchScalarGridSpec(
            num_scalar_prefetch=0,
            grid=grid,
            in_specs=[x_spec, wqkv_spec, bqkv_spec, wo_spec, bo_spec],
            out_specs=out_spec,
            scratch_shapes=[pltpu.VMEM((bt, S, H), dt)],
        ),
        compiler_params=pltpu.CompilerParams(
            dimension_semantics=("parallel",),     # batch blocks -> megacore
            vmem_limit_bytes=vmem_limit,
        ),
        cost_estimate=cost,
    )(hidden_states, w_qkv, b_qkv, wo_t, bo2)


def vit_attention_ref(x, wq, bq, wk, bk, wv, bv, wo, bo, *, num_heads):
    B, S, H = x.shape
    hd = H // num_heads

    def lin(a, w, b):
        return a @ w.T + b

    def split(a):
        return a.reshape(B, S, num_heads, hd).transpose(0, 2, 1, 3)

    q = split(lin(x, wq, bq))
    k = split(lin(x, wk, bk))
    v = split(lin(x, wv, bv))
    s = jnp.einsum('bhqd,bhkd->bhqk', q, k) / math.sqrt(hd)
    p = jax.nn.softmax(s, axis=-1)
    ctx = jnp.einsum('bhqk,bhkd->bhqd', p, v)
    ctx = ctx.transpose(0, 2, 1, 3).reshape(B, S, H)
    return lin(ctx, wo, bo)


if __name__ == "__main__":
    key = jax.random.PRNGKey(0)
    B, S, H, NH = 2, 8, 32, 4   # batch, seq, hidden, num_attention_heads

    keys = jax.random.split(key, 9)
    x = jax.random.normal(keys[0], (B, S, H), dtype=jnp.float32)
    std = 1.0 / math.sqrt(H)
    wq = jax.random.normal(keys[1], (H, H), jnp.float32) * std
    wk = jax.random.normal(keys[2], (H, H), jnp.float32) * std
    wv = jax.random.normal(keys[3], (H, H), jnp.float32) * std
    wo = jax.random.normal(keys[4], (H, H), jnp.float32) * std
    bq = jax.random.normal(keys[5], (H,), jnp.float32) * 0.01
    bk = jax.random.normal(keys[6], (H,), jnp.float32) * 0.01
    bv = jax.random.normal(keys[7], (H,), jnp.float32) * 0.01
    bo = jax.random.normal(keys[8], (H,), jnp.float32) * 0.01

    out = vit_attention(x, wq, bq, wk, bk, wv, bv, wo, bo, num_heads=NH)
    out = jax.block_until_ready(out)

    ref = vit_attention_ref(x, wq, bq, wk, bk, wv, bv, wo, bo, num_heads=NH)
    assert out.shape == (B, S, H)
    assert jnp.allclose(out, ref, atol=1e-4, rtol=1e-4), (
        f"mismatch vs reference: max abs err = {jnp.max(jnp.abs(out - ref))}")

    print("KERNEL_OK")
</pallas_src>

<mosaic_0001>
module attributes {stable_mosaic.version = 11 : i64} {
  func.func @_vit_attention_kernel(%arg0: i32, %arg1: memref<1x8x32xf32, #tpu.memory_space<vmem>>, %arg2: memref<32x96xf32, #tpu.memory_space<vmem>>, %arg3: memref<1x96xf32, #tpu.memory_space<vmem>>, %arg4: memref<32x32xf32, #tpu.memory_space<vmem>>, %arg5: memref<1x32xf32, #tpu.memory_space<vmem>>, %arg6: memref<1x8x32xf32, #tpu.memory_space<vmem>>, %arg7: memref<1x8x32xf32, #tpu.memory_space<vmem>>) attributes {dimension_semantics = [#tpu.dimension_semantics<parallel>], iteration_bounds = array<i64: 2>, scalar_prefetch = 0 : i64, scratch_operands = 1 : i64, tpu.core_type = #tpu.core_type<tc>, window_params = [{transform_indices = @transform_0, window_bounds = array<i64: 1, 8, 32>}, {pipeline_mode = #tpu.pipeline_mode<synchronous>, transform_indices = @transform_1, window_bounds = array<i64: 32, 96>}, {pipeline_mode = #tpu.pipeline_mode<synchronous>, transform_indices = @transform_2, window_bounds = array<i64: 1, 96>}, {pipeline_mode = #tpu.pipeline_mode<synchronous>, transform_indices = @transform_3, window_bounds = array<i64: 32, 32>}, {pipeline_mode = #tpu.pipeline_mode<synchronous>, transform_indices = @transform_4, window_bounds = array<i64: 1, 32>}, {transform_indices = @transform_5, window_bounds = array<i64: 1, 8, 32>}]} {
    %c0 = arith.constant 0 : index
    %c0_0 = arith.constant 0 : index
    %c0_1 = arith.constant 0 : index
    %0 = vector.load %arg1[%c0, %c0_0, %c0_1] : memref<1x8x32xf32, #tpu.memory_space<vmem>>, vector<1x8x32xf32>
    %c0_2 = arith.constant 0 : index
    %c0_3 = arith.constant 0 : index
    %1 = vector.load %arg2[%c0_2, %c0_3] : memref<32x96xf32, #tpu.memory_space<vmem>>, vector<32x96xf32>
    %cst = arith.constant dense<0.000000e+00> : vector<1x8x96xf32>
    %2 = tpu.matmul %0, %1, %cst {dimension_numbers = #tpu.dot_dimension_numbers<[2], [0], [0, 1], [1], [0, 0, 0, 1, 1, 1], [], []>} : vector<1x8x32xf32>, vector<32x96xf32>, vector<1x8x96xf32> -> vector<1x8x96xf32>
    %c0_4 = arith.constant 0 : index
    %c0_5 = arith.constant 0 : index
    %3 = vector.load %arg3[%c0_4, %c0_5] : memref<1x96xf32, #tpu.memory_space<vmem>>, vector<1x96xf32>
    %4 = vector.shape_cast %3 : vector<1x96xf32> to vector<1x1x96xf32>
    %5 = vector.broadcast %4 : vector<1x1x96xf32> to vector<1x8x96xf32>
    %6 = arith.addf %2, %5 : vector<1x8x96xf32>
    %7 = vector.extract_strided_slice %6 {offsets = [0, 0, 0], sizes = [1, 8, 32], strides = [1, 1, 1]} : vector<1x8x96xf32> to vector<1x8x32xf32>
    %8 = vector.extract_strided_slice %6 {offsets = [0, 0, 32], sizes = [1, 8, 32], strides = [1, 1, 1]} : vector<1x8x96xf32> to vector<1x8x32xf32>
    %9 = vector.extract_strided_slice %6 {offsets = [0, 0, 64], sizes = [1, 8, 32], strides = [1, 1, 1]} : vector<1x8x96xf32> to vector<1x8x32xf32>
    %10 = vector.extract_strided_slice %7 {offsets = [0, 0, 0], sizes = [1, 8, 8], strides = [1, 1, 1]} : vector<1x8x32xf32> to vector<1x8x8xf32>
    %11 = vector.shape_cast %10 : vector<1x8x8xf32> to vector<8x8xf32>
    %12 = vector.extract_strided_slice %8 {offsets = [0, 0, 0], sizes = [1, 8, 8], strides = [1, 1, 1]} : vector<1x8x32xf32> to vector<1x8x8xf32>
    %13 = vector.shape_cast %12 : vector<1x8x8xf32> to vector<8x8xf32>
    %14 = vector.extract_strided_slice %9 {offsets = [0, 0, 0], sizes = [1, 8, 8], strides = [1, 1, 1]} : vector<1x8x32xf32> to vector<1x8x8xf32>
    %15 = vector.shape_cast %14 : vector<1x8x8xf32> to vector<8x8xf32>
    %cst_6 = arith.constant dense<0.000000e+00> : vector<8x8xf32>
    %16 = tpu.matmul %11, %13, %cst_6 {dimension_numbers = #tpu.dot_dimension_numbers<[1], [1], [0], [0], [0, 0, 1, 0], [], []>} : vector<8x8xf32>, vector<8x8xf32>, vector<8x8xf32> -> vector<8x8xf32>
    %cst_7 = arith.constant dense<0xFF800000> : vector<8xf32>
    %17 = vector.multi_reduction <maximumf>, %16, %cst_7 [1] : vector<8x8xf32> to vector<8xf32>
    %18 = vector.shape_cast %17 : vector<8xf32> to vector<8x1xf32>
    %19 = vector.broadcast %18 : vector<8x1xf32> to vector<8x8xf32>
    %20 = arith.subf %16, %19 : vector<8x8xf32>
    %21 = math.exp %20 : vector<8x8xf32>
    %cst_8 = arith.constant dense<0.000000e+00> : vector<8xf32>
    %22 = vector.multi_reduction <add>, %21, %cst_8 [1] : vector<8x8xf32> to vector<8xf32>
    %23 = vector.shape_cast %22 : vector<8xf32> to vector<8x1xf32>
    %cst_9 = arith.constant dense<0.000000e+00> : vector<8x8xf32>
    %24 = tpu.matmul %21, %15, %cst_9 {dimension_numbers = #tpu.dot_dimension_numbers<[1], [0], [0], [1], [0, 0, 1, 1], [], []>} : vector<8x8xf32>, vector<8x8xf32>, vector<8x8xf32> -> vector<8x8xf32>
    %25 = tpu.reciprocal %23 : vector<8x1xf32> -> vector<8x1xf32>
    %26 = vector.broadcast %25 : vector<8x1xf32> to vector<8x8xf32>
    %27 = arith.mulf %24, %26 : vector<8x8xf32>
    %c0_10 = arith.constant 0 : index
    %c0_11 = arith.constant 0 : index
    %c0_12 = arith.constant 0 : index
    %28 = vector.load %arg7[%c0_10, %c0_11, %c0_12] : memref<1x8x32xf32, #tpu.memory_space<vmem>>, vector<1x8x8xf32>
    %29 = vector.shape_cast %28 : vector<1x8x8xf32> to vector<8x8xf32>
    %30 = vector.shape_cast %27 : vector<8x8xf32> to vector<1x8x8xf32>
    tpu.vector_store %arg7[%c0_10, %c0_11, %c0_12], %30 {strides = array<i32>} : memref<1x8x32xf32, #tpu.memory_space<vmem>>, vector<1x8x8xf32>,
    %31 = vector.extract_strided_slice %7 {offsets = [0, 0, 8], sizes = [1, 8, 8], strides = [1, 1, 1]} : vector<1x8x32xf32> to vector<1x8x8xf32>
    %32 = vector.shape_cast %31 : vector<1x8x8xf32> to vector<8x8xf32>
    %33 = vector.extract_strided_slice %8 {offsets = [0, 0, 8], sizes = [1, 8, 8], strides = [1, 1, 1]} : vector<1x8x32xf32> to vector<1x8x8xf32>
    %34 = vector.shape_cast %33 : vector<1x8x8xf32> to vector<8x8xf32>
    %35 = vector.extract_strided_slice %9 {offsets = [0, 0, 8], sizes = [1, 8, 8], strides = [1, 1, 1]} : vector<1x8x32xf32> to vector<1x8x8xf32>
    %36 = vector.shape_cast %35 : vector<1x8x8xf32> to vector<8x8xf32>
    %cst_13 = arith.constant dense<0.000000e+00> : vector<8x8xf32>
    %37 = tpu.matmul %32, %34, %cst_13 {dimension_numbers = #tpu.dot_dimension_numbers<[1], [1], [0], [0], [0, 0, 1, 0], [], []>} : vector<8x8xf32>, vector<8x8xf32>, vector<8x8xf32> -> vector<8x8xf32>
    %cst_14 = arith.constant dense<0xFF800000> : vector<8xf32>
    %38 = vector.multi_reduction <maximumf>, %37, %cst_14 [1] : vector<8x8xf32> to vector<8xf32>
    %39 = vector.shape_cast %38 : vector<8xf32> to vector<8x1xf32>
    %40 = vector.broadcast %39 : vector<8x1xf32> to vector<8x8xf32>
    %41 = arith.subf %37, %40 : vector<8x8xf32>
    %42 = math.exp %41 : vector<8x8xf32>
    %cst_15 = arith.constant dense<0.000000e+00> : vector<8xf32>
    %43 = vector.multi_reduction <add>, %42, %cst_15 [1] : vector<8x8xf32> to vector<8xf32>
    %44 = vector.shape_cast %43 : vector<8xf32> to vector<8x1xf32>
    %cst_16 = arith.constant dense<0.000000e+00> : vector<8x8xf32>
    %45 = tpu.matmul %42, %36, %cst_16 {dimension_numbers = #tpu.dot_dimension_numbers<[1], [0], [0], [1], [0, 0, 1, 1], [], []>} : vector<8x8xf32>, vector<8x8xf32>, vector<8x8xf32> -> vector<8x8xf32>
    %46 = tpu.reciprocal %44 : vector<8x1xf32> -> vector<8x1xf32>
    %47 = vector.broadcast %46 : vector<8x1xf32> to vector<8x8xf32>
    %48 = arith.mulf %45, %47 : vector<8x8xf32>
    %c0_17 = arith.constant 0 : index
    %c0_18 = arith.constant 0 : index
    %c8 = arith.constant 8 : index
    %49 = vector.load %arg7[%c0_17, %c0_18, %c8] : memref<1x8x32xf32, #tpu.memory_space<vmem>>, vector<1x8x8xf32>
    %50 = vector.shape_cast %49 : vector<1x8x8xf32> to vector<8x8xf32>
    %51 = vector.shape_cast %48 : vector<8x8xf32> to vector<1x8x8xf32>
    tpu.vector_store %arg7[%c0_17, %c0_18, %c8], %51 {strides = array<i32>} : memref<1x8x32xf32, #tpu.memory_space<vmem>>, vector<1x8x8xf32>,
    %52 = vector.extract_strided_slice %7 {offsets = [0, 0, 16], sizes = [1, 8, 8], strides = [1, 1, 1]} : vector<1x8x32xf32> to vector<1x8x8xf32>
    %53 = vector.shape_cast %52 : vector<1x8x8xf32> to vector<8x8xf32>
    %54 = vector.extract_strided_slice %8 {offsets = [0, 0, 16], sizes = [1, 8, 8], strides = [1, 1, 1]} : vector<1x8x32xf32> to vector<1x8x8xf32>
    %55 = vector.shape_cast %54 : vector<1x8x8xf32> to vector<8x8xf32>
    %56 = vector.extract_strided_slice %9 {offsets = [0, 0, 16], sizes = [1, 8, 8], strides = [1, 1, 1]} : vector<1x8x32xf32> to vector<1x8x8xf32>
    %57 = vector.shape_cast %56 : vector<1x8x8xf32> to vector<8x8xf32>
    %cst_19 = arith.constant dense<0.000000e+00> : vector<8x8xf32>
    %58 = tpu.matmul %53, %55, %cst_19 {dimension_numbers = #tpu.dot_dimension_numbers<[1], [1], [0], [0], [0, 0, 1, 0], [], []>} : vector<8x8xf32>, vector<8x8xf32>, vector<8x8xf32> -> vector<8x8xf32>
    %cst_20 = arith.constant dense<0xFF800000> : vector<8xf32>
    %59 = vector.multi_reduction <maximumf>, %58, %cst_20 [1] : vector<8x8xf32> to vector<8xf32>
    %60 = vector.shape_cast %59 : vector<8xf32> to vector<8x1xf32>
    %61 = vector.broadcast %60 : vector<8x1xf32> to vector<8x8xf32>
    %62 = arith.subf %58, %61 : vector<8x8xf32>
    %63 = math.exp %62 : vector<8x8xf32>
    %cst_21 = arith.constant dense<0.000000e+00> : vector<8xf32>
    %64 = vector.multi_reduction <add>, %63, %cst_21 [1] : vector<8x8xf32> to vector<8xf32>
    %65 = vector.shape_cast %64 : vector<8xf32> to vector<8x1xf32>
    %cst_22 = arith.constant dense<0.000000e+00> : vector<8x8xf32>
    %66 = tpu.matmul %63, %57, %cst_22 {dimension_numbers = #tpu.dot_dimension_numbers<[1], [0], [0], [1], [0, 0, 1, 1], [], []>} : vector<8x8xf32>, vector<8x8xf32>, vector<8x8xf32> -> vector<8x8xf32>
    %67 = tpu.reciprocal %65 : vector<8x1xf32> -> vector<8x1xf32>
    %68 = vector.broadcast %67 : vector<8x1xf32> to vector<8x8xf32>
    %69 = arith.mulf %66, %68 : vector<8x8xf32>
    %c0_23 = arith.constant 0 : index
    %c0_24 = arith.constant 0 : index
    %c16 = arith.constant 16 : index
    %70 = vector.load %arg7[%c0_23, %c0_24, %c16] : memref<1x8x32xf32, #tpu.memory_space<vmem>>, vector<1x8x8xf32>
    %71 = vector.shape_cast %70 : vector<1x8x8xf32> to vector<8x8xf32>
    %72 = vector.shape_cast %69 : vector<8x8xf32> to vector<1x8x8xf32>
    tpu.vector_store %arg7[%c0_23, %c0_24, %c16], %72 {strides = array<i32>} : memref<1x8x32xf32, #tpu.memory_space<vmem>>, vector<1x8x8xf32>,
    %73 = vector.extract_strided_slice %7 {offsets = [0, 0, 24], sizes = [1, 8, 8], strides = [1, 1, 1]} : vector<1x8x32xf32> to vector<1x8x8xf32>
    %74 = vector.shape_cast %73 : vector<1x8x8xf32> to vector<8x8xf32>
    %75 = vector.extract_strided_slice %8 {offsets = [0, 0, 24], sizes = [1, 8, 8], strides = [1, 1, 1]} : vector<1x8x32xf32> to vector<1x8x8xf32>
    %76 = vector.shape_cast %75 : vector<1x8x8xf32> to vector<8x8xf32>
    %77 = vector.extract_strided_slice %9 {offsets = [0, 0, 24], sizes = [1, 8, 8], strides = [1, 1, 1]} : vector<1x8x32xf32> to vector<1x8x8xf32>
    %78 = vector.shape_cast %77 : vector<1x8x8xf32> to vector<8x8xf32>
    %cst_25 = arith.constant dense<0.000000e+00> : vector<8x8xf32>
    %79 = tpu.matmul %74, %76, %cst_25 {dimension_numbers = #tpu.dot_dimension_numbers<[1], [1], [0], [0], [0, 0, 1, 0], [], []>} : vector<8x8xf32>, vector<8x8xf32>, vector<8x8xf32> -> vector<8x8xf32>
    %cst_26 = arith.constant dense<0xFF800000> : vector<8xf32>
    %80 = vector.multi_reduction <maximumf>, %79, %cst_26 [1] : vector<8x8xf32> to vector<8xf32>
    %81 = vector.shape_cast %80 : vector<8xf32> to vector<8x1xf32>
    %82 = vector.broadcast %81 : vector<8x1xf32> to vector<8x8xf32>
    %83 = arith.subf %79, %82 : vector<8x8xf32>
    %84 = math.exp %83 : vector<8x8xf32>
    %cst_27 = arith.constant dense<0.000000e+00> : vector<8xf32>
    %85 = vector.multi_reduction <add>, %84, %cst_27 [1] : vector<8x8xf32> to vector<8xf32>
    %86 = vector.shape_cast %85 : vector<8xf32> to vector<8x1xf32>
    %cst_28 = arith.constant dense<0.000000e+00> : vector<8x8xf32>
    %87 = tpu.matmul %84, %78, %cst_28 {dimension_numbers = #tpu.dot_dimension_numbers<[1], [0], [0], [1], [0, 0, 1, 1], [], []>} : vector<8x8xf32>, vector<8x8xf32>, vector<8x8xf32> -> vector<8x8xf32>
    %88 = tpu.reciprocal %86 : vector<8x1xf32> -> vector<8x1xf32>
    %89 = vector.broadcast %88 : vector<8x1xf32> to vector<8x8xf32>
    %90 = arith.mulf %87, %89 : vector<8x8xf32>
    %c0_29 = arith.constant 0 : index
    %c0_30 = arith.constant 0 : index
    %c24 = arith.constant 24 : index
    %91 = vector.load %arg7[%c0_29, %c0_30, %c24] : memref<1x8x32xf32, #tpu.memory_space<vmem>>, vector<1x8x8xf32>
    %92 = vector.shape_cast %91 : vector<1x8x8xf32> to vector<8x8xf32>
    %93 = vector.shape_cast %90 : vector<8x8xf32> to vector<1x8x8xf32>
    tpu.vector_store %arg7[%c0_29, %c0_30, %c24], %93 {strides = array<i32>} : memref<1x8x32xf32, #tpu.memory_space<vmem>>, vector<1x8x8xf32>,
    %c0_31 = arith.constant 0 : index
    %c0_32 = arith.constant 0 : index
    %c0_33 = arith.constant 0 : index
    %94 = vector.load %arg7[%c0_31, %c0_32, %c0_33] : memref<1x8x32xf32, #tpu.memory_space<vmem>>, vector<1x8x32xf32>
    %c0_34 = arith.constant 0 : index
    %c0_35 = arith.constant 0 : index
    %95 = vector.load %arg4[%c0_34, %c0_35] : memref<32x32xf32, #tpu.memory_space<vmem>>, vector<32x32xf32>
    %cst_36 = arith.constant dense<0.000000e+00> : vector<1x8x32xf32>
    %96 = tpu.matmul %94, %95, %cst_36 {dimension_numbers = #tpu.dot_dimension_numbers<[2], [0], [0, 1], [1], [0, 0, 0, 1, 1, 1], [], []>} : vector<1x8x32xf32>, vector<32x32xf32>, vector<1x8x32xf32> -> vector<1x8x32xf32>
    %c0_37 = arith.constant 0 : index
    %c0_38 = arith.constant 0 : index
    %97 = vector.load %arg5[%c0_37, %c0_38] : memref<1x32xf32, #tpu.memory_space<vmem>>, vector<1x32xf32>
    %98 = vector.shape_cast %97 : vector<1x32xf32> to vector<1x1x32xf32>
    %99 = vector.broadcast %98 : vector<1x1x32xf32> to vector<1x8x32xf32>
    %100 = arith.addf %96, %99 : vector<1x8x32xf32>
    %c0_39 = arith.constant 0 : index
    %c0_40 = arith.constant 0 : index
    %c0_41 = arith.constant 0 : index
    %101 = vector.load %arg6[%c0_39, %c0_40, %c0_41] : memref<1x8x32xf32, #tpu.memory_space<vmem>>, vector<1x8x32xf32>
    tpu.vector_store %arg6[%c0_39, %c0_40, %c0_41], %100 {strides = array<i32>} : memref<1x8x32xf32, #tpu.memory_space<vmem>>, vector<1x8x32xf32>,
    return
  }
  func.func @transform_0(%arg0: i32) -> (i32, i32, i32) {
    %c0_i32 = arith.constant 0 : i32
    %c0_i32_0 = arith.constant 0 : i32
    %c0_i32_1 = arith.constant 0 : i32
    return %arg0, %c0_i32, %c0_i32_0 : i32, i32, i32
  }
  func.func @transform_1(%arg0: i32) -> (i32, i32) {
    %c0_i32 = arith.constant 0 : i32
    %c0_i32_0 = arith.constant 0 : i32
    %c0_i32_1 = arith.constant 0 : i32
    return %c0_i32, %c0_i32_0 : i32, i32
  }
  func.func @transform_2(%arg0: i32) -> (i32, i32) {
    %c0_i32 = arith.constant 0 : i32
    %c0_i32_0 = arith.constant 0 : i32
    %c0_i32_1 = arith.constant 0 : i32
    return %c0_i32, %c0_i32_0 : i32, i32
  }
  func.func @transform_3(%arg0: i32) -> (i32, i32) {
    %c0_i32 = arith.constant 0 : i32
    %c0_i32_0 = arith.constant 0 : i32
    %c0_i32_1 = arith.constant 0 : i32
    return %c0_i32, %c0_i32_0 : i32, i32
  }
  func.func @transform_4(%arg0: i32) -> (i32, i32) {
    %c0_i32 = arith.constant 0 : i32
    %c0_i32_0 = arith.constant 0 : i32
    %c0_i32_1 = arith.constant 0 : i32
    return %c0_i32, %c0_i32_0 : i32, i32
  }
  func.func @transform_5(%arg0: i32) -> (i32, i32, i32) {
    %c0_i32 = arith.constant 0 : i32
    %c0_i32_0 = arith.constant 0 : i32
    %c0_i32_1 = arith.constant 0 : i32
    return %arg0, %c0_i32, %c0_i32_0 : i32, i32, i32
  }
}

</mosaic_0001>

<bundles_post_ra>
// kernel: tpu_custom_call.1
= control target key start
LH: loop header
LB: loop body
LE: loop exit
PB: predicated region body
PF: predicated region fallthrough
CT: control target
= control target key end

     0   :  { %10 = vsyncpa [#allocation4], 0  ;;  %s1977_s0 = inlined_call_operand.hbm [shape: f32[2,8,32], index: 0, kind: input, shape index: {}]   ;;  %s1978_s1 = inlined_call_operand.hbm [shape: f32[32,96], index: 1, kind: input, shape index: {}]   ;;  %s1979_s2 = inlined_call_operand.vmem [shape: f32[1,96], index: 2, kind: input, shape index: {}]   ;;  %s1980_s3 = inlined_call_operand.hbm [shape: f32[32,32], index: 3, kind: input, shape index: {}]   ;;  %s1981_s4 = inlined_call_operand.vmem [shape: f32[1,32], index: 4, kind: input, shape index: {}]   ;;  %s1982_s5 = inlined_call_operand.hbm [shape: f32[2,8,32], index: 5, kind: output, shape index: {}]  }
   0x1   :  { %12 = vsyncpa [#allocation4 + $0x1], 0 }
   0x2   :  { %13 = vsyncpa [#allocation7], 0 }
   0x3   :  { %14 = vsyncpa [#allocation5], 0 }
   0x4   :  { %16 = vsyncpa [#allocation5 + $0x1], 0  ;;  %s1668_s18 = smov 0   ;;  %s1670_s19 = smov 0  }
   0x5   :  { %s1672_s20 = smov 0   ;;  %s1674_s21 = smov 0  }
   0x6 LB: > { %s1689_s22 = sadd.s32 4294967295, %s1613_s21   ;;  %s1223_s23 = sadd.s32 4294967294, %s1613_s21   ;;  %s1613_s21 = sphi %s1674_s21, %s2002_s21   ;;  %s1609_s20 = sphi %s1672_s20, %s2001_s20   ;;  %s1605_s19 = sphi %s1670_s19, %s2000_s19   ;;  %s1601_s18 = sphi %s1668_s18, %s1999_s18  }
   0x7   : > { %p42_p0 = scmp.ne.s32.totalorder %s1605_s19, %s1601_s18  ;;  %p1983_p1 = scmp.eq.s32.totalorder %s1689_s22, 0 }
   0x8   : > { %p156_p3 = scmp.eq.s32.totalorder %s1223_s23, 1  ;;  %p1224_p5 = scmp.ge.s32.totalorder %s1613_s21, 1 }
   0x9   : > { %p1698_p4 = por %p1983_p1, %p42_p0  ;;  %p163_p7 = scmp.lt.s32.totalorder %s1613_s21, 3 }
   0xa   : > { %p1703_p6 = por %p156_p3, %p42_p0  ;;  %s1615_s27 = smov [#allocation6]  }
   0xb   : > { %s1986_s24 = scalar_select %p1698_p4, 1, 0 }
   0xc   : > { %s1987_s25 = scalar_select %p1703_p6, 1, 0 }
   0xd   : > { %p1708_p8 = pnand %p1224_p5, %p163_p7  ;;  %s175_s28 = sshll.u32 %s1615_s27, 4  ;;  %s1712_s28 = int_to_ptr.vmem [resolvable:$true] %s175_s28 }
   0xe   : > { %s1616_s30 = smov [#allocation8]   ;;  %s1457_s9 = scalar_lea.hbm %s1978_s1, 512 }
   0xf   : > { %p1367_p9 = pneg %p1708_p8  ;;  %s191_s6 = sshll.u32 %s1616_s30, 4  ;;  %s1723_s6 = int_to_ptr.vmem [resolvable:$true] %s191_s6 }
  0x10   : > { %p1458_p12 = scmp.ne.s32.totalorder %s1978_s1, %s1457_s9  ;;  %p1464_p5 = scmp.lt.u32.totalorder %s1457_s9, %s1978_s1 }
  0x11   : > { %p1719_p11 = pnand %p1367_p9, %p1983_p1 }
  0x13   : > { %p1459_p13 = pneg %p1719_p11 }
  0x15   : > { %p1460_p0 = pnand %p1459_p13, %p1458_p12 }
  0x17   : > { %p1461_p3 = pneg %p1460_p0 }
  0x19   : > { %p1466_p7 = pnand %p1464_p5, %p1461_p3 }
  0x1b   : > { %1469 = shalt.err (!%p1466_p7)
}
  0x1c   : > { %s1470_s14 = scalar_lea.vmem %s1712_s28, 512  ;;  %p1478_p2 = scmp.lt.s32.totalorder %s1712_s28, %s1712_s28 }
  0x1d   : > { %p1471_p9 = scmp.ne.s32.totalorder %s1712_s28, %s1470_s14  ;;  %p1479_p12 = scmp.lt.s32.totalorder %s1470_s14, %s1470_s14 }
  0x1f   : > { %p1473_p10 = pnand %p1471_p9, %p1459_p13  ;;  %p1480_p0 = por %p1479_p12, %p1478_p2 }
  0x21   : > { %p1474_p1 = pneg %p1473_p10 }
  0x23   : > { %p1481_p6 = pnand %p1480_p0, %p1474_p1 }
  0x25   : > { %1484 = shalt.err (!%p1481_p6)
}
  0x26   : > { %s1617_s15 = smov 128   ;;  %s1618_s16 = smov 8  }
  0x27   : > { %1370 = dma.hbm_to_vmem [thread:$0]  (!%p1719_p11), %s1978_s1, 512, %s1712_s28, [#allocation7], %s1617_s15, %s1617_s15, %s1618_s16  }
  0x28   : > { %s1485_s7 = scalar_lea.hbm %s1980_s3, 512 }
  0x29   : > { %p1486_p2 = scmp.ne.s32.totalorder %s1980_s3, %s1485_s7  ;;  %p1492_p10 = scmp.lt.u32.totalorder %s1485_s7, %s1980_s3 }
  0x2b   : > { %p1488_p1 = pnand %p1486_p2, %p1459_p13 }
  0x2d   : > { %p1489_p6 = pneg %p1488_p1 }
  0x2f   : > { %p1494_p3 = pnand %p1492_p10, %p1489_p6 }
  0x31   : > { %1497 = shalt.err (!%p1494_p3)
}
  0x32   : > { %s1498_s28 = scalar_lea.vmem %s1723_s6, 512  ;;  %p1506_p12 = scmp.lt.s32.totalorder %s1723_s6, %s1723_s6 }
  0x33   : > { %p1499_p5 = scmp.ne.s32.totalorder %s1723_s6, %s1498_s28  ;;  %p1507_p0 = scmp.lt.s32.totalorder %s1498_s28, %s1498_s28 }
  0x35   : > { %p1501_p7 = pnand %p1499_p5, %p1459_p13  ;;  %p1508_p2 = por %p1507_p0, %p1506_p12 }
  0x37   : > { %p1502_p9 = pneg %p1501_p7 }
  0x39   : > { %p1509_p1 = pnand %p1508_p2, %p1502_p9 }
  0x3b   : > { %1512 = shalt.err (!%p1509_p1)
}
  0x3c   : > { %1373 = dma.hbm_to_vmem [thread:$0]  (!%p1719_p11), %s1980_s3, 512, %s1723_s6, [#allocation7], %s1617_s15, %s1617_s15, %s1618_s16  }
  0x3d   : > { %s1778_s14 = sadd.s32 1, %s1613_s21   ;;  %s29_s29 = sadd.s32 1, %s1609_s20 }
  0x3e   : > { %s26_s17 = ssub.s32 %s1613_s21, %s1778_s14  ;;  %p36_p13 = scmp.ne.s32.totalorder %s1609_s20, %s1605_s19 }
  0x3f   : > { %p27_p6 = scmp.eq.s32.totalorder %s26_s17, 0  ;;  %p37_p10 = scmp.eq.s32.totalorder %s1613_s21, 0 }
  0x40   : > { %p1990_p3 = scmp.eq.s32.totalorder %s1689_s22, 1  ;;  %p1384_p7 = scmp.lt.s32.totalorder %s1613_s21, 2 }
  0x41   : > { %s1794_s27 = scalar_select %p27_p6, %s1609_s20, %s29_s29  }
  0x42   : > { %p1788_p5 = por %p1990_p3, %p36_p13  ;;  %p38_p9 = por %p37_p10, %p36_p13 }
  0x43   : > { %s208_s30 = sand.u32 1, %s1609_s20   ;;  %s1229_s6 = sshll.u32 %s1613_s21, 7 }
  0x44   : > { %s1991_s23 = scalar_select %p1788_p5, 1, 0 }
  0x45   : > { %s1228_s7 = sshll.u32 %s208_s30, 3  ;;  %s1801_s8 = scalar_lea.hbm %s1977_s0, %s1229_s6 }
  0x46   : > { %s212_s9 = scalar_lea.vmem [#allocation3], %s1228_s7  ;;  %p1805_p11 = pnand %p1384_p7, %p38_p9 }
  0x47   : > { %s219_s10 = sshll.u32 %s212_s9, 4  ;;  %s209_s28 = scalar_lea.sflag [#allocation4], %s208_s30  ;;  %s1803_s10 = int_to_ptr.vmem [resolvable:$true] %s219_s10 }
  0x48   : > { %s1513_s12 = scalar_lea.hbm %s1801_s8, 128  ;;  %p1515_p0 = pneg %p1805_p11 }
  0x49   : > { %p1514_p12 = scmp.ne.s32.totalorder %s1801_s8, %s1513_s12  ;;  %s1518_s17 = scalar_lea.hbm %s1977_s0, 256 }
  0x4a   : > { %p1519_p13 = scmp.lt.u32.totalorder %s1801_s8, %s1977_s0  ;;  %p1520_p6 = scmp.lt.u32.totalorder %s1518_s17, %s1513_s12 }
  0x4b   : > { %p1516_p2 = pnand %p1515_p0, %p1514_p12  ;;  %p1522_p3 = scmp.lt.u32.totalorder %s1513_s12, %s1801_s8 }
  0x4c   : > { %p1521_p10 = por %p1520_p6, %p1519_p13 }
  0x4d   : > { %p1517_p1 = pneg %p1516_p2 }
  0x4e   : > { %p1523_p7 = por %p1522_p3, %p1521_p10 }
  0x50   : > { %p1524_p9 = pnand %p1523_p7, %p1517_p1 }
  0x52   : > { %1527 = shalt.err (!%p1524_p9)
}
  0x53   : > { %s1528_s30 = scalar_lea.vmem %s1803_s10, 128  ;;  %s1619_s15 = smov [#allocation3]  }
  0x54   : > { %p1529_p12 = scmp.ne.s32.totalorder %s1803_s10, %s1528_s30  ;;  %s1533_s16 = sshll.u32 %s1619_s15, 4  ;;  %s1534_s16 = int_to_ptr.vmem [resolvable:$false] %s1533_s16 }
  0x55   : > { %s1535_s9 = scalar_lea.vmem %s1534_s16, 256  ;;  %p1536_p4 = scmp.lt.s32.totalorder %s1803_s10, %s1534_s16 }
  0x56   : > { %p1531_p2 = pnand %p1529_p12, %p1515_p0  ;;  %p1537_p13 = scmp.lt.s32.totalorder %s1535_s9, %s1528_s30 }
  0x58   : > { %p1532_p5 = pneg %p1531_p2  ;;  %p1538_p6 = por %p1537_p13, %p1536_p4 }
  0x5a   : > { %p1539_p10 = pnand %p1538_p6, %p1532_p5 }
  0x5c   : > { %1542 = shalt.err (!%p1539_p10)
}
  0x5d   : > { %1377 = dma.hbm_to_vmem [thread:$0]  (!%p1805_p11), %s1801_s8, 128, %s1803_s10, %s209_s28  }
  0x5e   : > { %228 = sbr.rel (%p1708_p8) target bundleno = 1764 (0x6e4), region = 40  ;;  %s1837_s12 = sand.u32 (!%p1708_p8), 1, %s1605_s19  }
  0x5f   : > { %s1231_s13 = sshll.u32 (!%p1708_p8), %s1837_s12, 3  ;;  %s231_s29 = scalar_lea.sflag (!%p1708_p8), [#allocation4], %s1837_s12 }
  0x60   : > { %s234_s17 = scalar_lea.vmem (!%p1708_p8), [#allocation3], %s1231_s13  ;;  %p1993_p4 = scmp.ne.s32.totalorder (!%p1708_p8), %s1986_s24, 0 }
  0x65   : > { %1588 = dma.done.wait (%p1993_p4), %s231_s29, 128  }
  0x66   : > { %1590 = vsyncadd (%p1993_p4), %s231_s29, 4294967168  ;;  %p1994_p5 = scmp.eq.s32.totalorder %s1689_s22, 0 }
  0x68   : > { %1592 = dma.done.wait (%p1994_p5), [#allocation7], 1024   ;;  %p1995_p8 = pmov %p1994_p5 }
  0x69   : > { %v1620_v0 = vmov 0.0|0.0   ;;  %vm1621_vm0 = vmmov 0   ;;  %v1622_v1 = vmov 0.0   ;;  %v270_v2 = vld [vmem:[#allocation6] sm:$0xff]  ;;  %v271_v3 = vld [vmem:[#allocation6 + $0x8] sm:$0xff]  ;;  %v272_v4 = vld [vmem:[#allocation6 + $0x10] sm:$0xff] }
  0x6a   : > { %1594 = vsyncadd (%p1995_p8), [#allocation7], 4294966272  ;;  %1343 = vmatprep.subr.bf16.mxu0 %v1620_v0  ;;  %1289 = vmatprep.mubr.msk.f32.mxu0 %vm1621_vm0, %v1622_v1  ;;  %v1344_v5 = vpack.c.bf16 %v271_v3, %v270_v2  ;;  %v273_v6 = vld [vmem:[#allocation6 + $0x18] sm:$0xff]  ;;  %vm281_vm1 = vcmask 261120   ;;  %v1235_v9 = vld [vmem:[%s1979_s2] ss:$0 sm:$0xff] }
  0x6b   : > { %1292 = vmatprep.subr.mxu1 %v1622_v1  ;;  %1294 = vmatprep.mubr.msk.f32.mxu1 %vm1621_vm0, %v1622_v1  ;;  %v1347_v7 = vpack.c.bf16 %v273_v6, %v272_v4  ;;  %v269_v8 = vld [vmem:[%s234_s17] sm:$0xff]  ;;  %s1623_s8 = smov 64   ;;  %s1624_s10 = smov 96   ;;  %vm358_vm2 = vcmask 64512   ;;  %v1035_v2 = vld [vmem:[#allocation8] sm:$0xff]  ;;  %v1036_v3 = vld [vmem:[#allocation8 + $0x8] sm:$0xff] }
  0x6c   : > { %1345 = vmatpush3.bf16.msra.mxu0 %v1344_v5  ;;  %s1625_s11 = smov 88   ;;  %s1626_s28 = smov 120   ;;  %v1037_v4 = vld [vmem:[#allocation8 + $0x10] sm:$0xff]  ;;  %v1038_v5 = vld [vmem:[#allocation8 + $0x18] sm:$0xff]  ;;  %vm690_vm3 = vcmask 130112   ;;  %vm861_vm4 = vcmask 195712  }
  0x6d   : > { %1346 = vmatprep.subr.bf16.mxu0 %v1620_v0  ;;  %s1627_s7 = smov 80   ;;  %s1628_s6 = smov 112   ;;  %vm1032_vm5 = vcmask 261312  }
  0x6e   : > { %s1629_s30 = smov 72   ;;  %s1630_s15 = smov 104  }
  0x6f   : > { %s1631_s16 = smov 56   ;;  %s1632_s9 = smov 40  }
  0x70   : > { %1348 = vmatpush3.bf16.msra.mxu0 %v1347_v7  ;;  %s1633_s29 = smov 48   ;;  %s1634_s17 = smov 8  }
  0x71   : > { %1312 = vmatprep.subr.mxu0 %v1622_v1  ;;  %s1635_s24 = smov 16   ;;  %s1636_s26 = smov 24  }
  0x72   : > { %p1996_p0 = scmp.ne.s32.totalorder %s1991_s23, 0 }
  0x73   : > { %1290 = vmatmul.mubr.msk.f32.vlgmr.msra.gmra.mrb[0].mxu0 %vm281_vm1, %v269_v8  ;;  %v1353_v8 = vpack.c.bf16 %v1038_v5, %v1037_v4 }
  0x74   : > { %1314 = vmatprep.mubr.msk.f32.mxu0 %vm1621_vm0, %v1622_v1 }
 0x146   : > { %v351_v10 = vpop.f32.mrb[0].mxu0 }
 0x147   : > { %v1865_v11 = vadd.f32 %v1235_v9, %v351_v10  ;;  %v1291_v12 = vpop.f32.mrb[1].mxu0 }
 0x149   : > { %442 = vrot.lane.b32.xlu1 %v1865_v11, %s1623_s8  ;;  %356 = vrot.lane.b32.xlu0 %v1865_v11, %s1624_s10 }
 0x14d   : > { %523 = vrot.lane.b32.xlu1 %v1865_v11, %s1625_s11  ;;  %s1252_s11 = sshll.u32 %s1689_s22, 7 }
 0x151   : > { %521 = vrot.lane.b32.xlu1 %v1865_v11, %s1626_s28  ;;  %s268_s28 = scalar_lea.vmem [#allocation9], %s1231_s13  ;;  %s1637_s13 = smov [#allocation9]  }
 0x155   : > { %694 = vrot.lane.b32.xlu1 %v1865_v11, %s1627_s7  ;;  %s1134_s7 = sshll.u32 %s268_s28, 4  ;;  %s1934_s7 = int_to_ptr.vmem [resolvable:$true] %s1134_s7 }
 0x156   : > { %s1543_s22 = scalar_lea.vmem %s1934_s7, 128 }
 0x157   : > { %p1544_p11 = scmp.ne.s32.totalorder %s1934_s7, %s1543_s22 }
 0x159   : > { %692 = vrot.lane.b32.xlu1 %v1865_v11, %s1628_s6  ;;  %p1545_p1 = pnand %p1544_p11, %p1996_p0 }
 0x15b   : > { %p1546_p3 = pneg %p1545_p1 }
 0x15d   : > { %865 = vrot.lane.b32.xlu1 %v1865_v11, %s1629_s30 }
 0x161   : > { %863 = vrot.lane.b32.xlu1 %v1865_v11, %s1630_s15  ;;  %s1932_s15 = scalar_lea.hbm %s1982_s5, %s1252_s11 }
 0x1bb   : > { %v443_v13 = vpop.permute.xlu1 %442  ;;  %v357_v14 = vpop.permute.xlu0 %356 }
 0x1bc   : > { %1293 = vmatpush3.xpose.msk.msra.mxu1 %vm358_vm2, %v357_v14 }
 0x1bd   : > { %1297 = vmatprep.subr.mxu1 %v1622_v1 }
 0x1bf   : > { %v524_v15 = vpop.permute.xlu1 %523  ;;  %1295 = vmatmul.mubr.msk.f32.vlgmr.msra.gmra.mrb[0].mxu1 %vm358_vm2, %v1865_v11 }
 0x1c0   : > { %1298 = vmatpush3.msra.mxu1 %v443_v13  ;;  %1299 = vmatprep.mubr.msk.f32.mxu1 %vm1621_vm0, %v1622_v1 }
 0x1c1   : > { %1302 = vmatprep.subr.mxu1 %v1622_v1 }
 0x1c3   : > { %v522_v16 = vpop.permute.xlu1 %521 }
 0x1c7   : > { %v695_v17 = vpop.permute.xlu1 %694 }
 0x1c8   : > { %1313 = vmatpush3.xpose.msk.msra.mxu0 %vm358_vm2, %v695_v17 }
 0x1c9   : > { %1322 = vmatprep.subr.mxu0 %v1622_v1 }
 0x1cb   : > { %v693_v18 = vpop.permute.xlu1 %692 }
 0x1cc   : > { %1315 = vmatmul.mubr.msk.f32.vlgmr.msra.gmra.mrb[2].mxu0 %vm358_vm2, %v693_v18 }
 0x1cd   : > { %1324 = vmatprep.mubr.msk.f32.mxu0 %vm1621_vm0, %v1622_v1 }
 0x1cf   : > { %v866_v19 = vpop.permute.xlu1 %865 }
 0x1d0   : > { %1323 = vmatpush3.xpose.msk.msra.mxu0 %vm358_vm2, %v866_v19 }
 0x1d1   : > { %1349 = vmatprep.subr.bf16.mxu0 %v1620_v0 }
 0x1d3   : > { %v864_v20 = vpop.permute.xlu1 %863 }
 0x1d4   : > { %1325 = vmatmul.mubr.msk.f32.vlgmr.msra.gmra.mrb[4].mxu0 %vm358_vm2, %v864_v20 }
 0x1d5   : > { %1340 = vmatprep.mubr.msk.f32.mxu0 %vm1621_vm0, %v1622_v1 }
 0x292   : > { %v429_v21 = vpop.f32.mrb[0].mxu1 }
 0x293   : > { %v1296_v22 = vpop.f32.mrb[1].mxu1  ;;  %v433_v23 = vsel %vm358_vm2, %v429_v21, -inf }
 0x294   : > { %434 = vmax.xlane.f32.xlu0 %v433_v23  ;;  %v1249_v22 = vld [vmem:[%s1981_s4] ss:$0 sm:$0xff] }
 0x29f   : > { %v766_v24 = vpop.f32.mrb[2].mxu0 }
 0x2a0   : > { %v1316_v25 = vpop.f32.mrb[3].mxu0  ;;  %v770_v28 = vsel %vm358_vm2, %v766_v24, -inf }
 0x2a7   : > { %v937_v26 = vpop.f32.mrb[4].mxu0 }
 0x2a8   : > { %v1326_v27 = vpop.f32.mrb[5].mxu0  ;;  %v941_v29 = vsel %vm358_vm2, %v937_v26, -inf }
 0x2aa   : > { %608 = vrot.lane.b32.xlu0 %v1865_v11, %s1631_s16  ;;  %s1121_s16 = scalar_lea.sflag [#allocation5], %s1837_s12 }
 0x2c9   : > { %771 = vmax.xlane.f32.xlu0 %v770_v28 }
 0x2cd   : > { %942 = vmax.xlane.f32.xlu0 %v941_v29 }
 0x2e3   : > { %950 = vrot.lane.b32.xlu0 %v1865_v11, %s1632_s9  ;;  %s1547_s9 = sshll.u32 %s1637_s13, 4  ;;  %s1548_s9 = int_to_ptr.vmem [resolvable:$false] %s1547_s9 }
 0x2e4   : > { %p1550_p7 = scmp.lt.s32.totalorder %s1934_s7, %s1548_s9 }
 0x321   : > { %v435_v30 = vpop.xlane.xlu0 %434 }
 0x322   : > { %v436_v31 = vsub.f32 %v429_v21, %v435_v30 }
 0x324   : > { %v437_v32 = vmul.f32 1.442695, %v436_v31 }
 0x325   : > { %v609_v34 = vpop.permute.xlu0 %608 }
 0x326   : > { %1441 = vpow2.f32 %v437_v32 }
 0x330   : > { %v1442_v33 = vpop.eup %1441 }
 0x331   : > { %1300 = vmatmul.mubr.msk.f32.vlgmr.msra.gmra.mrb[2].mxu1 %vm358_vm2, %v1442_v33  ;;  %v439_v57 = vsel %vm358_vm2, %v1442_v33, 0.0 }
 0x332   : > { %1303 = vmatpush3.xpose.msk.msra.mxu1 %vm358_vm2, %v524_v15  ;;  %1304 = vmatprep.mubr.msk.f32.mxu1 %vm1621_vm0, %v1622_v1 }
 0x333   : > { %1307 = vmatprep.subr.mxu1 %v1622_v1 }
 0x335   : > { %1305 = vmatmul.mubr.msk.f32.vlgmr.msra.gmra.mrb[4].mxu1 %vm358_vm2, %v522_v16 }
 0x336   : > { %1308 = vmatpush3.msra.mxu1 %v609_v34  ;;  %1309 = vmatprep.mubr.msk.f32.mxu1 %vm1621_vm0, %v1622_v1 }
 0x337   : > { %1317 = vmatprep.subr.mxu1 %v1622_v1 }
 0x356   : > { %v772_v40 = vpop.xlane.xlu0 %771 }
 0x357   : > { %v773_v41 = vsub.f32 %v766_v24, %v772_v40 }
 0x359   : > { %v774_v42 = vmul.f32 1.442695, %v773_v41 }
 0x35a   : > { %v943_v45 = vpop.xlane.xlu0 %942 }
 0x35b   : > { %1443 = vpow2.f32 %v774_v42  ;;  %v944_v46 = vsub.f32 %v937_v26, %v943_v45 }
 0x35d   : > { %v945_v49 = vmul.f32 1.442695, %v944_v46 }
 0x35e   : > { %v951_v55 = vpop.permute.xlu0 %950 }
 0x365   : > { %v1444_v43 = vpop.eup %1443 }
 0x366   : > { %v776_v44 = vsel %vm358_vm2, %v1444_v43, 0.0 }
 0x404   : > { %v514_v35 = vpop.f32.mrb[2].mxu1 }
 0x405   : > { %v1301_v36 = vpop.f32.mrb[3].mxu1 }
 0x408   : > { %v595_v37 = vpop.f32.mrb[4].mxu1 }
 0x409   : > { %v1306_v38 = vpop.f32.mrb[5].mxu1  ;;  %v599_v39 = vsel %vm358_vm2, %v595_v37, -inf }
 0x40a   : > { %600 = vmax.xlane.f32.xlu1 %v599_v39 }
 0x41b   : > { %779 = vrot.lane.b32.xlu1 %v1865_v11, %s1633_s29  ;;  %s1549_s29 = scalar_lea.vmem %s1548_s9, 256 }
 0x41c   : > { %p1551_p9 = scmp.lt.s32.totalorder %s1549_s29, %s1543_s22 }
 0x41e   : > { %p1552_p12 = por %p1551_p9, %p1550_p7 }
 0x420   : > { %p1553_p2 = pnand %p1552_p12, %p1546_p3 }
 0x43f   : > { %777 = vadd.xlane.f32.xlu1 %v776_v44 }
 0x497   : > { %v601_v47 = vpop.xlane.xlu1 %600 }
 0x498   : > { %v602_v48 = vsub.f32 %v595_v37, %v601_v47 }
 0x49a   : > { %v603_v50 = vmul.f32 1.442695, %v602_v48 }
 0x49b   : > { %v780_v52 = vpop.permute.xlu1 %779 }
 0x49c   : > { %1445 = vpow2.f32 %v603_v50 }
 0x49d   : > { %1447 = vpow2.f32 %v945_v49 }
 0x4a6   : > { %v1446_v51 = vpop.eup %1445 }
 0x4a7   : > { %1310 = vmatmul.mubr.msk.f32.vlgmr.msra.gmra.mrb[6].mxu1 %vm358_vm2, %v1446_v51  ;;  %v605_v53 = vsel %vm358_vm2, %v1446_v51, 0.0  ;;  %v1448_v54 = vpop.eup %1447 }
 0x4a8   : > { %1318 = vmatpush3.msra.mxu1 %v780_v52  ;;  %606 = vadd.xlane.f32.xlu0 %v605_v53  ;;  %v947_v56 = vsel %vm358_vm2, %v1448_v54, 0.0 }
 0x4a9   : > { %1319 = vmatprep.mubr.msk.f32.mxu1 %vm1621_vm0, %v1622_v1  ;;  %1327 = vmatprep.subr.mxu1 %v1622_v1 }
 0x4ab   : > { %1320 = vmatmul.mubr.msk.f32.vlgmr.msra.gmra.mrb[8].mxu1 %vm358_vm2, %v1444_v43 }
 0x4ac   : > { %1328 = vmatpush3.msra.mxu1 %v951_v55  ;;  %948 = vadd.xlane.f32.xlu0 %v947_v56 }
 0x4ad   : > { %1329 = vmatprep.mubr.msk.f32.mxu1 %vm1621_vm0, %v1622_v1  ;;  %v1350_v1 = vpack.c.bf16 %v1036_v3, %v1035_v2 }
 0x4af   : > { %1330 = vmatmul.mubr.msk.f32.vlgmr.msra.gmra.mrb[10].mxu1 %vm358_vm2, %v1448_v54  ;;  %1351 = vmatpush3.bf16.msra.mxu0 %v1350_v1 }
 0x4b0   : > { %440 = vadd.xlane.f32.xlu0 %v439_v57  ;;  %1352 = vmatprep.subr.bf16.mxu0 %v1620_v0 }
 0x4b3   : > { %1354 = vmatpush3.bf16.msra.mxu0 %v1353_v8 }
 0x4cc   : > { %v778_v63 = vpop.xlane.xlu1 %777 }
 0x535   : > { %v607_v58 = vpop.xlane.xlu0 %606 }
 0x539   : > { %v949_v59 = vpop.xlane.xlu0 %948 }
 0x53d   : > { %v441_v60 = vpop.xlane.xlu0 %440 }
 0x53e   : > { %1449 = vrcp.f32 %v441_v60 }
 0x53f   : > { %1451 = vrcp.f32 %v607_v58 }
 0x540   : > { %1453 = vrcp.f32 %v778_v63 }
 0x541   : > { %1455 = vrcp.f32 %v949_v59 }
 0x548   : > { %v1450_v61 = vpop.eup %1449 }
 0x549   : > { %v519_v62 = vmul.f32 %v1450_v61, %v514_v35  ;;  %v1452_v6 = vpop.eup %1451 }
 0x54a   : > { %v1454_v11 = vpop.eup %1453 }
 0x54b   : > { %520 = vst.msk [vmem:[#allocation2] sm:$0xff] %vm358_vm2, %v519_v62  ;;  %v1456_v15 = vpop.eup %1455 }
 0x57a   : > { %v680_v7 = vpop.f32.mrb[6].mxu1 }
 0x57b   : > { %v685_v9 = vmul.f32 %v1452_v6, %v680_v7  ;;  %v1311_v10 = vpop.f32.mrb[7].mxu1 }
 0x57d   : > { %687 = vrot.lane.b32.xlu0 %v685_v9, %s1634_s17 }
 0x57e   : > { %v851_v12 = vpop.f32.mrb[8].mxu1 }
 0x57f   : > { %v856_v13 = vmul.f32 %v1454_v11, %v851_v12  ;;  %v1321_v14 = vpop.f32.mrb[9].mxu1 }
 0x581   : > { %858 = vrot.lane.b32.xlu1 %v856_v13, %s1635_s24 }
 0x582   : > { %v1022_v16 = vpop.f32.mrb[10].mxu1 }
 0x583   : > { %v1027_v17 = vmul.f32 %v1456_v15, %v1022_v16  ;;  %v1331_v18 = vpop.f32.mrb[11].mxu1 }
 0x585   : > { %1029 = vrot.lane.b32.xlu0 %v1027_v17, %s1636_s26 }
 0x5ef   : > { %v688_v19 = vpop.permute.xlu0 %687 }
 0x5f0   : > { %691 = vst.msk [vmem:[#allocation2] sm:$0xff] %vm690_vm3, %v688_v19 }
 0x5f3   : > { %v859_v0 = vpop.permute.xlu1 %858 }
 0x5f4   : > { %862 = vst.msk [vmem:[#allocation2] sm:$0xff] %vm861_vm4, %v859_v0 }
 0x5f7   : > { %v1030_v20 = vpop.permute.xlu0 %1029 }
 0x5f8   : > { %1033 = vst.msk [vmem:[#allocation2] sm:$0xff] %vm1032_vm5, %v1030_v20 }
 0x5ff   : > { %v1034_v21 = vld [vmem:[#allocation2] sm:$0xff] }
 0x600   : > { %1341 = vmatmul.mubr.msk.f32.vlgmr.msra.gmra.mrb[6].mxu0 %vm281_vm1, %v1034_v21 }
 0x6d3   : > { %v1115_v23 = vpop.f32.mrb[6].mxu0 }
 0x6d4   : > { %v1116_v24 = vadd.f32 %v1249_v22, %v1115_v23  ;;  %v1342_v25 = vpop.f32.mrb[7].mxu0 }
 0x6d6   : > { %1119 = vst.msk [vmem:[%s268_s28] sm:$0xff] %vm281_vm1, %v1116_v24 }
 0x6d7   : > { %1556 = shalt.err (!%p1553_p2)
}
 0x6d8   : > { %s1557_s12 = scalar_lea.hbm %s1932_s15, 128  ;;  %s1561_s26 = scalar_lea.hbm %s1982_s5, 256 }
 0x6d9   : > { %p1558_p13 = scmp.ne.s32.totalorder %s1932_s15, %s1557_s12  ;;  %p1562_p4 = scmp.lt.u32.totalorder %s1932_s15, %s1982_s5 }
 0x6da   : > { %p1563_p5 = scmp.lt.u32.totalorder %s1561_s26, %s1557_s12  ;;  %p1565_p11 = scmp.lt.u32.totalorder %s1557_s12, %s1932_s15 }
 0x6db   : > { %p1559_p6 = pnand %p1558_p13, %p1996_p0 }
 0x6dc   : > { %p1564_p8 = por %p1563_p5, %p1562_p4 }
 0x6dd   : > { %p1560_p10 = pneg %p1559_p6 }
 0x6de   : > { %p1566_p1 = por %p1565_p11, %p1564_p8 }
 0x6e0   : > { %p1567_p3 = pnand %p1566_p1, %p1560_p10 }
 0x6e2   : > { %1570 = shalt.err (!%p1567_p3)
}
 0x6e3   : > { %1365 = dma.vmem_to_hbm [thread:$0]  (%p1996_p0), %s1934_s7, 128, %s1932_s15, %s1121_s16  }
 0x6e4 PF: > { %s1146_s11 = sand.u32 1, %s1601_s18   ;;  %p1997_p7 = scmp.ne.s32.totalorder %s1987_s25, 0 }
 0x6e5   : > { %p1998_p9 = scmp.ge.s32.totalorder %s1613_s21, 2  ;;  %s1147_s28 = scalar_lea.sflag [#allocation5], %s1146_s11 }
 0x6e7   : > { %p1379_p12 = pnand %p1998_p9, %p1997_p7 }
 0x6e9   : > { %1596 = dma.done.wait (!%p1379_p12), %s1147_s28, 128  }
 0x6ea   : > { %1598 = vsyncadd (!%p1379_p12), %s1147_s28, 4294967168  ;;  %p19_p2 = scmp.ge.s32.totalorder %s1778_s14, 4   ;;  %s1999_s18 = smov %s1605_s19 }
 0x6eb   : > { %s2000_s19 = smov %s1609_s20  ;;  %s2001_s20 = smov %s1794_s27 }
 0x6ec   : > { %s2002_s21 = smov %s1778_s14  ;;  %21 = sbr.rel (!%p19_p2) target bundleno = 6 (0x6), region = 93 }
 0x6f3   :  { %1152 = vsyncpa [#allocation4], 1 }
 0x6f4   :  { %1154 = vsyncpa [#allocation4 + $0x1], 1 }
 0x6f5   :  { %1155 = vsyncpa [#allocation7], 1 }
 0x6f6   :  { %1156 = vsyncpa [#allocation5], 1 }
 0x6f7   :  { %1158 = vsyncpa [#allocation5 + $0x1], 1 }

</bundles_post_ra>
